<compile_context>
chip_gen: v6e
topology: v6e:2x2x1
jax: 0.10.0
libtpu: 0.0.40
codegen_flags: <defaults>
</compile_context>

<pallas_src>
import functools

import jax
import jax.numpy as jnp
from jax.experimental import pallas as pl
from jax.experimental.pallas import tpu as pltpu


def _make_mlp_kernel(n_layers):
    """Kernel arg order: x_ref, w0, b0, w1, b1, ..., out_ref.

    w_i: (d_i, d_{i+1}) bf16 (pre-transposed), b_i: (1, d_{i+1}) f32.
    """

    def kernel(*refs):
        x_ref = refs[0]
        out_ref = refs[-1]
        param_refs = refs[1:-1]

        h = x_ref[...].astype(jnp.float32)               # (1, d0)
        for i in range(n_layers):
            # bf16 in VMEM (half the DMA bytes), upcast for f32 accumulate.
            w = param_refs[2 * i][...].astype(jnp.float32)    # (d_i, d_{i+1})
            b = param_refs[2 * i + 1][...]                    # (1, d_{i+1})
            h = jnp.dot(h, w, preferred_element_type=jnp.float32) + b
            if i < n_layers - 1:
                h = jnp.maximum(h, 0.0)                  # ReLU

        # Stable log-softmax over the single feature row
        # (== PyTorch LogSoftmax(dim=0) on the 1-D output vector).
        m = jnp.max(h, axis=-1, keepdims=True)
        z = h - m
        lse = jnp.log(jnp.sum(jnp.exp(z), axis=-1, keepdims=True))
        out_ref[...] = z - lse

    return kernel


def prepare_params(weights, biases, weight_dtype=jnp.bfloat16):
    """One-time parameter conversion (call OUTSIDE jit / the hot loop).

    weights[i]: (d_{i+1}, d_i) PyTorch layout -> transposed to (d_i, d_{i+1})
    and downcast to `weight_dtype` (bf16 by default). biases -> (1, d_{i+1}) f32.
    """
    flat = []
    for w, b in zip(weights, biases):
        flat.append(jnp.asarray(w).T.astype(weight_dtype))            # (d_in, d_out)
        flat.append(jnp.asarray(b).reshape(1, -1).astype(jnp.float32))  # (1, d_out)
    return tuple(flat)


@functools.partial(jax.jit, static_argnames=("model_param",))
def mlp_forward(x, flat_params, *, model_param):
    """x: (in_dim,) f32. flat_params: output of prepare_params.
    Returns (1, model_param[-1]) f32 log-probabilities."""
    n_layers = len(model_param) - 1
    out_dim = model_param[-1]

    x2 = x.reshape(1, model_param[0]).astype(jnp.float32)
    operands = (x2,) + tuple(flat_params)

    kernel = _make_mlp_kernel(n_layers)

    # Everything (tiny) lives resident in VMEM: full-array blocks, no grid.
    in_specs = [pl.BlockSpec(memory_space=pltpu.MemorySpace.VMEM)
                for _ in operands]

    # Advisory cost hint for XLA's scheduler.
    flops = 2 * sum(model_param[i] * model_param[i + 1] for i in range(n_layers))
    bytes_accessed = (sum(int(a.size) * a.dtype.itemsize for a in operands)
                      + out_dim * 4)
    transcendentals = out_dim + 1  # exp per output element + one log

    # Explicit VMEM budget: operand bytes (+ headroom); safe for v7x's 64 MiB.
    vmem_limit = int(min(100 * 1024 * 1024,
                         max(8 * 1024 * 1024, 4 * bytes_accessed)))

    out = pl.pallas_call(
        kernel,
        out_shape=jax.ShapeDtypeStruct((1, out_dim), jnp.float32),
        in_specs=in_specs,
        out_specs=pl.BlockSpec(memory_space=pltpu.MemorySpace.VMEM),
        cost_estimate=pl.CostEstimate(flops=flops,
                                      transcendentals=transcendentals,
                                      bytes_accessed=bytes_accessed),
        compiler_params=pltpu.CompilerParams(vmem_limit_bytes=vmem_limit),
    )(*operands)
    return out


def _reference_forward(x, flat_params, model_param):
    """Pure-JAX reference using the SAME prepared (bf16-rounded, pre-transposed)
    parameters, mirroring the PyTorch module's math."""
    h = x.astype(jnp.float32)
    n_layers = len(model_param) - 1
    for i in range(n_layers):
        w = flat_params[2 * i].astype(jnp.float32)        # (d_in, d_out)
        b = flat_params[2 * i + 1].reshape(-1)
        h = h @ w + b
        if i < n_layers - 1:
            h = jnp.maximum(h, 0.0)
    h = jax.nn.log_softmax(h, axis=0)
    return h.reshape(1, model_param[-1])


if __name__ == "__main__":
    # Small shapes consistent with the module: model_param = [32, 64, 16]
    model_param = (32, 64, 16)
    key = jax.random.PRNGKey(0)

    weights, biases = [], []
    for i in range(len(model_param) - 1):
        fan_in, fan_out = model_param[i], model_param[i + 1]
        key, kw, kb = jax.random.split(key, 3)
        bound = 1.0 / jnp.sqrt(fan_in)
        # Deterministic init matching nn.Linear's uniform(-1/sqrt(fan_in), ...) scale.
        weights.append(jax.random.uniform(kw, (fan_out, fan_in), jnp.float32,
                                          minval=-bound, maxval=bound))
        biases.append(jax.random.uniform(kb, (fan_out,), jnp.float32,
                                         minval=-bound, maxval=bound))

    key, kx = jax.random.split(key)
    x = jax.random.normal(kx, (model_param[0],), jnp.float32)

    # One-time parameter prep (outside jit / hot path).
    flat_params = prepare_params(weights, biases)

    y = mlp_forward(x, flat_params, model_param=model_param)
    y = jax.block_until_ready(y)

    y_ref = _reference_forward(x, flat_params, model_param)
    assert y.shape == (1, model_param[-1])
    assert jnp.allclose(y, y_ref, atol=1e-3, rtol=1e-3), (y, y_ref)

    print("KERNEL_OK")
</pallas_src>

<mosaic_0001>
module attributes {stable_mosaic.version = 11 : i64} {
  func.func @kernel(%arg0: memref<1x32xf32, #tpu.memory_space<vmem>>, %arg1: memref<32x64xbf16, #tpu.memory_space<vmem>>, %arg2: memref<1x64xf32, #tpu.memory_space<vmem>>, %arg3: memref<64x16xbf16, #tpu.memory_space<vmem>>, %arg4: memref<1x16xf32, #tpu.memory_space<vmem>>, %arg5: memref<1x16xf32, #tpu.memory_space<vmem>>) attributes {dimension_semantics = [], scalar_prefetch = 0 : i64, scratch_operands = 0 : i64, tpu.core_type = #tpu.core_type<tc>} {
    %c0 = arith.constant 0 : index
    %c0_0 = arith.constant 0 : index
    %0 = vector.load %arg0[%c0, %c0_0] : memref<1x32xf32, #tpu.memory_space<vmem>>, vector<1x32xf32>
    %c0_1 = arith.constant 0 : index
    %c0_2 = arith.constant 0 : index
    %1 = vector.load %arg1[%c0_1, %c0_2] : memref<32x64xbf16, #tpu.memory_space<vmem>>, vector<32x64xbf16>
    %2 = arith.extf %1 : vector<32x64xbf16> to vector<32x64xf32>
    %c0_3 = arith.constant 0 : index
    %c0_4 = arith.constant 0 : index
    %3 = vector.load %arg2[%c0_3, %c0_4] : memref<1x64xf32, #tpu.memory_space<vmem>>, vector<1x64xf32>
    %cst = arith.constant dense<0.000000e+00> : vector<1x64xf32>
    %4 = tpu.matmul %0, %2, %cst {dimension_numbers = #tpu.dot_dimension_numbers<[1], [0], [0], [1], [0, 0, 1, 1], [], []>} : vector<1x32xf32>, vector<32x64xf32>, vector<1x64xf32> -> vector<1x64xf32>
    %5 = arith.addf %4, %3 : vector<1x64xf32>
    %cst_5 = arith.constant 0.000000e+00 : f32
    %6 = vector.broadcast %cst_5 : f32 to vector<1x64xf32>
    %7 = arith.maximumf %5, %6 : vector<1x64xf32>
    %c0_6 = arith.constant 0 : index
    %c0_7 = arith.constant 0 : index
    %8 = vector.load %arg3[%c0_6, %c0_7] : memref<64x16xbf16, #tpu.memory_space<vmem>>, vector<64x16xbf16>
    %9 = arith.extf %8 : vector<64x16xbf16> to vector<64x16xf32>
    %c0_8 = arith.constant 0 : index
    %c0_9 = arith.constant 0 : index
    %10 = vector.load %arg4[%c0_8, %c0_9] : memref<1x16xf32, #tpu.memory_space<vmem>>, vector<1x16xf32>
    %cst_10 = arith.constant dense<0.000000e+00> : vector<1x16xf32>
    %11 = tpu.matmul %7, %9, %cst_10 {dimension_numbers = #tpu.dot_dimension_numbers<[1], [0], [0], [1], [0, 0, 1, 1], [], []>} : vector<1x64xf32>, vector<64x16xf32>, vector<1x16xf32> -> vector<1x16xf32>
    %12 = arith.addf %11, %10 : vector<1x16xf32>
    %cst_11 = arith.constant dense<0xFF800000> : vector<1xf32>
    %13 = vector.multi_reduction <maximumf>, %12, %cst_11 [1] : vector<1x16xf32> to vector<1xf32>
    %14 = vector.shape_cast %13 : vector<1xf32> to vector<1x1xf32>
    %15 = vector.broadcast %14 : vector<1x1xf32> to vector<1x16xf32>
    %16 = arith.subf %12, %15 : vector<1x16xf32>
    %17 = math.exp %16 : vector<1x16xf32>
    %cst_12 = arith.constant dense<0.000000e+00> : vector<1xf32>
    %18 = vector.multi_reduction <add>, %17, %cst_12 [1] : vector<1x16xf32> to vector<1xf32>
    %19 = vector.shape_cast %18 : vector<1xf32> to vector<1x1xf32>
    %20 = math.log %19 : vector<1x1xf32>
    %21 = vector.broadcast %20 : vector<1x1xf32> to vector<1x16xf32>
    %22 = arith.subf %16, %21 : vector<1x16xf32>
    %c0_13 = arith.constant 0 : index
    %c0_14 = arith.constant 0 : index
    %23 = vector.load %arg5[%c0_13, %c0_14] : memref<1x16xf32, #tpu.memory_space<vmem>>, vector<1x16xf32>
    tpu.vector_store %arg5[%c0_13, %c0_14], %22 {strides = array<i32>} : memref<1x16xf32, #tpu.memory_space<vmem>>, vector<1x16xf32>,
    return
  }
}

</mosaic_0001>

<bundles_post_ra>
// kernel: mlp_forward.1
= control target key start
LH: loop header
LB: loop body
LE: loop exit
PB: predicated region body
PF: predicated region fallthrough
CT: control target
= control target key end

     0   :  { %v328_v2 = vmov 0.0   ;;  %vm329_vm0 = vmmov 0   ;;  %s394_s0 = inlined_call_operand.vmem [shape: f32[1,32], index: 0, kind: input, shape index: {}]   ;;  %s395_s1 = inlined_call_operand.vmem [shape: bf16[32,64], index: 1, kind: input, shape index: {}]   ;;  %s396_s2 = inlined_call_operand.vmem [shape: f32[1,64], index: 2, kind: input, shape index: {}]   ;;  %s397_s3 = inlined_call_operand.vmem [shape: bf16[64,16], index: 3, kind: input, shape index: {}]   ;;  %s398_s4 = inlined_call_operand.vmem [shape: f32[1,16], index: 4, kind: input, shape index: {}]   ;;  %s399_s5 = inlined_call_operand.hbm [shape: f32[1,16], index: 5, kind: output, shape index: {}]  }
   0x1   :  { %v251_v0 = vld [vmem:[%s395_s1 + $0x8] sm:$0xff]   ;;  %v228_v1 = vld [vmem:[%s395_s1] sm:$0xff]   ;;  %269 = vmatprep.subr.mxu0 %v328_v2  ;;  %277 = vmatprep.mubr.msk.f32.mxu0 %vm329_vm0, %v328_v2  ;;  %v254_v5 = vld [vmem:[%s397_s3 + $0x18] sm:$0xff]  }
   0x2   :  { %v233_v3 = vunpack.c.l.bf16 %v251_v0  ;;  %v234_v4 = vunpack.c.h.bf16 %v251_v0  ;;  %v253_v6 = vld [vmem:[%s397_s3 + $0x10] sm:$0xff]   ;;  %280 = vmatprep.subr.mxu1 %v328_v2  ;;  %v249_v7 = vunpack.c.l.bf16 %v254_v5  ;;  %v250_v8 = vunpack.c.h.bf16 %v254_v5  ;;  %296 = vmatprep.mubr.msk.f32.mxu1 %vm329_vm0, %v328_v2 }
   0x3   :  { %10 = vsyncpa [#allocation3], 0  ;;  %v230_v9 = vunpack.c.h.bf16 %v228_v1  ;;  %v246_v10 = vunpack.c.h.bf16 %v253_v6  ;;  %v229_v11 = vunpack.c.l.bf16 %v228_v1  ;;  %v252_v12 = vld [vmem:[%s397_s3 + $0x8] sm:$0xff]   ;;  %v245_v13 = vunpack.c.l.bf16 %v253_v6  ;;  %v21_v14 = vld [vmem:[%s394_s0] sm:$0x1] }
   0x4   :  { %270 = vmatpush3.msra.mxu0 %v234_v4  ;;  %281 = vmatpush3.msra.mxu1 %v250_v8  ;;  %vm31_vm1 = vcmask 261120   ;;  %v242_v15 = vunpack.c.h.bf16 %v252_v12  ;;  %v241_v16 = vunpack.c.l.bf16 %v252_v12  ;;  %v236_v17 = vld [vmem:[%s397_s3] sm:$0xff]   ;;  %vm123_vm2 = vcmask 523264  }
   0x5   :  { %271 = vmatprep.subr.mxu0 %v328_v2  ;;  %282 = vmatprep.subr.mxu1 %v328_v2  ;;  %v238_v18 = vunpack.c.h.bf16 %v236_v17  ;;  %v237_v19 = vunpack.c.l.bf16 %v236_v17  ;;  %v30_v20 = vld [vmem:[%s396_s2] sm:$0x1]  ;;  %vm197_vm3 = vcmask 122880   ;;  %s330_s2 = smov [#allocation2]  }
   0x6   :  { %272 = vmatpush3.msra.mxu0 %v233_v3  ;;  %283 = vmatpush3.msra.mxu1 %v249_v7  ;;  %v122_v25 = vld [vmem:[%s398_s4] sm:$0x1]  ;;  %s217_s3 = sshll.u32 %s330_s2, 4  ;;  %s218_s3 = int_to_ptr.vmem [resolvable:$true] %s217_s3 }
   0x7   :  { %273 = vmatprep.subr.mxu0 %v328_v2  ;;  %284 = vmatprep.subr.mxu1 %v328_v2  ;;  %s306_s4 = scalar_lea.vmem %s218_s3, 16  ;;  %s310_s9 = scalar_lea.vmem %s218_s3, 32 }
   0x8   :  { %274 = vmatpush3.msra.mxu0 %v230_v9  ;;  %285 = vmatpush3.msra.mxu1 %v246_v10  ;;  %p307_p0 = scmp.ne.s32.totalorder %s218_s3, %s306_s4  ;;  %p311_p1 = scmp.lt.s32.totalorder %s218_s3, %s218_s3 }
   0x9   :  { %275 = vmatprep.subr.mxu0 %v328_v2  ;;  %286 = vmatprep.subr.mxu1 %v328_v2  ;;  %p312_p2 = scmp.lt.s32.totalorder %s310_s9, %s306_s4 }
   0xa   :  { %276 = vmatpush3.msra.mxu0 %v229_v11  ;;  %287 = vmatpush3.msra.mxu1 %v245_v13 }
   0xb   :  { %278 = vmatmul.mubr.msk.f32.vlgmr.msra.gmra.mxu0 %vm31_vm1, %v21_v14  ;;  %288 = vmatprep.subr.mxu1 %v328_v2  ;;  %p313_p3 = por %p312_p2, %p311_p1 }
   0xc   :  { %289 = vmatpush3.msra.mxu1 %v242_v15 }
   0xd   :  { %290 = vmatprep.subr.mxu1 %v328_v2  ;;  %p314_p4 = pnand %p313_p3, %p307_p0 }
   0xe   :  { %291 = vmatpush3.msra.mxu1 %v241_v16 }
   0xf   :  { %292 = vmatprep.subr.mxu1 %v328_v2 }
  0x10   :  { %293 = vmatpush3.msra.mxu1 %v238_v18 }
  0x11   :  { %294 = vmatprep.subr.mxu1 %v328_v2 }
  0x12   :  { %295 = vmatpush3.msra.mxu1 %v237_v19 }
  0xcb   :  { %v101_v21 = vpop.f32.mrf.mxu0 }
  0xcc   :  { %v102_v22 = vadd.f32 %v101_v21, %v30_v20 }
  0xcd   :  { %v279_v23 = vpop.f32.mrf.mxu0 }
  0xce   :  { %v105_v24 = vmax.f32 %v102_v22, 0.0 }
  0xd0   :  { %297 = vmatmul.mubr.msk.f32.vlgmr.msra.gmra.mxu1 %vm123_vm2, %v105_v24 }
 0x190   :  { %v193_v26 = vpop.f32.mrf.mxu1 }
 0x191   :  { %v194_v27 = vadd.f32 %v193_v26, %v122_v25 }
 0x192   :  { %v298_v28 = vpop.f32.mrf.mxu1 }
 0x193   :  { %v198_v29 = vsel %vm197_vm3, %v194_v27, -inf }
 0x194   :  { %199 = vmax.xlane.f32.xlu0 %v198_v29 }
 0x21d   :  { %v200_v30 = vpop.xlane.xlu0 %199 }
 0x21e   :  { %v201_v31 = vsub.f32 %v194_v27, %v200_v30 }
 0x220   :  { %v202_v32 = vmul.f32 1.442695, %v201_v31 }
 0x222   :  { %302 = vpow2.f32 %v202_v32 }
 0x22f   :  { %v303_v33 = vpop.eup %302 }
 0x230   :  { %v204_v34 = vsel %vm197_vm3, %v303_v33, 0.0 }
 0x231   :  { %205 = vadd.xlane.f32.xlu0 %v204_v34 }
 0x2ba   :  { %v206_v35 = vpop.xlane.xlu0 %205 }
 0x2bb   :  { %304 = vlog2.f32 %v206_v35 }
 0x2c8   :  { %v305_v36 = vpop.eup %304 }
 0x2c9   :  { %v208_v37 = vmul.f32 0.6931472, %v305_v36 }
 0x2cb   :  { %v209_v38 = vsub.f32 %v201_v31, %v208_v37 }
 0x2cd   :  { %210 = vst.msk [vmem:[#allocation2] sm:$0x1] %vm197_vm3, %v209_v38 }
 0x2ce   :  { %317 = shalt.err (!%p314_p4)
}
 0x2cf   :  { %220 = dma.vmem_to_hbm [thread:$0]  %s218_s3, 16, %s399_s5, [#allocation3]  }
 0x2d0   :  { %326 = dma.done.wait [#allocation3], 16  }
 0x2d1   :  { %327 = vsyncadd [#allocation3], 4294967280 }
 0x2d2   :  { %224 = vsyncpa [#allocation3], 1 }

</bundles_post_ra>
